<compile_context>
chip_gen: v7x
topology: tpu7x:2x2x1
jax: 0.10.0
libtpu: 0.0.40
codegen_flags: <defaults>
</compile_context>

<pallas_src>
from functools import partial

import jax
import jax.numpy as jnp
from jax.experimental import pallas as pl
from jax.experimental.pallas import tpu as pltpu

LANES = 128          # lane width: minimum for unmasked vector stores
ROW_ALIGN = 32       # row padding unit -> satisfies int8/bool (32,128) packing
TILE_R = 4096        # rows per tile; ~22 MiB double-buffered for 7 arrays


def _make_kernel(mask_dtype):
    def kernel(x_ref, add_ref, sub_ref, mul_ref, div_ref, gt_ref, lt_ref):
        x = x_ref[...]
        add_ref[...] = x + 10.0
        sub_ref[...] = x - 5.0
        mul_ref[...] = x * 2.0
        div_ref[...] = x * 0.5          # exact for divisor 2, matches x / 2
        gt_ref[...] = (x > 5.0).astype(mask_dtype)
        lt_ref[...] = (x < 10.0).astype(mask_dtype)
    return kernel


def _run_tiled(x2d, mask_dtype):
    rows = x2d.shape[0]                  # static, multiple of ROW_ALIGN
    tile_r = min(TILE_R, rows)
    grid = (pl.cdiv(rows, tile_r),)
    blk = pl.BlockSpec((tile_r, LANES), lambda i: (i, 0))

    out_shapes = (
        jax.ShapeDtypeStruct((rows, LANES), x2d.dtype),   # add
        jax.ShapeDtypeStruct((rows, LANES), x2d.dtype),   # sub
        jax.ShapeDtypeStruct((rows, LANES), x2d.dtype),   # mul
        jax.ShapeDtypeStruct((rows, LANES), x2d.dtype),   # div
        jax.ShapeDtypeStruct((rows, LANES), mask_dtype),  # greater_than
        jax.ShapeDtypeStruct((rows, LANES), mask_dtype),  # less_than
    )

    return pl.pallas_call(
        _make_kernel(mask_dtype),
        out_shape=out_shapes,
        grid=grid,
        in_specs=[blk],
        out_specs=(blk,) * 6,
        compiler_params=pltpu.CompilerParams(
            dimension_semantics=("parallel",),
            # ~22 MiB actual double-buffered footprint at TILE_R=4096.
            # Explicit limit keeps TILE_R>=4096 working under v5e's 16 MiB
            # scoped default; 32 MiB fits v5e/v6e (128 MiB) and v7x (64 MiB).
            vmem_limit_bytes=32 * 1024 * 1024,
        ),
    )(x2d)


# ---------------------------------------------------------------------------
# One-time cached capability probe: can this jax/libtpu build lower a Pallas
# kernel with bool VMEM outputs?  Probe is AOT (lower + compile of a tiny
# representative kernel) so it never masks errors from the real call path.
# ---------------------------------------------------------------------------
_MASK_IS_BOOL_CACHE = None


def _mask_is_bool():
    global _MASK_IS_BOOL_CACHE
    if _MASK_IS_BOOL_CACHE is None:
        try:
            probe = jax.ShapeDtypeStruct((ROW_ALIGN, LANES), jnp.float32)
            jax.jit(lambda a: _run_tiled(a, jnp.bool_)).lower(probe).compile()
            _MASK_IS_BOOL_CACHE = True
        except Exception:  # isolated probe; fall back to int8 masks
            _MASK_IS_BOOL_CACHE = False
    return _MASK_IS_BOOL_CACHE


@partial(jax.jit, static_argnames=("mask_is_bool",))
def _forward_jit(x, *, mask_is_bool):
    mask_dtype = jnp.bool_ if mask_is_bool else jnp.int8
    orig_shape = x.shape
    n_elem = x.size

    # Flatten to a lane-dense slab; pad so rows is a multiple of 32 (keeps the
    # int8/bool mask outputs on clean (32,128) packing tiles for any size).
    pad_unit = LANES * ROW_ALIGN
    padded = ((n_elem + pad_unit - 1) // pad_unit) * pad_unit
    flat = x.reshape(-1)
    if padded != n_elem:
        # TODO(synk): for very large unaligned inputs the pad + output slices
        # add extra HBM passes; an aligned-prefix kernel + jnp tail epilogue
        # would remove them, at the cost of a concat per output.
        flat = jnp.pad(flat, (0, padded - n_elem))
    rows = padded // LANES
    x2d = flat.reshape(rows, LANES)

    outs = _run_tiled(x2d, mask_dtype)

    def unpad(a):
        if padded == n_elem:
            return a.reshape(orig_shape)        # free under jit
        return a.reshape(-1)[:n_elem].reshape(orig_shape)

    add_r, sub_r, mul_r, div_r, gt_r, lt_r = outs
    gt_r = unpad(gt_r)
    lt_r = unpad(lt_r)
    if not mask_is_bool:
        # Fallback only: one extra elementwise pass over the two mask arrays.
        gt_r = gt_r.astype(jnp.bool_)
        lt_r = lt_r.astype(jnp.bool_)

    return (unpad(add_r), unpad(sub_r), unpad(mul_r), unpad(div_r), gt_r, lt_r)


def pt_module_forward(x):
    """Equivalent of PtModule.forward. x: float32 array of any shape."""
    return _forward_jit(x, mask_is_bool=_mask_is_bool())


if __name__ == "__main__":
    key = jax.random.PRNGKey(0)
    # Small NCHW input, consistent with a generic tensor module.
    x = jax.random.uniform(key, (2, 4, 16, 16), dtype=jnp.float32,
                           minval=0.0, maxval=15.0)

    outs = pt_module_forward(x)
    outs = jax.block_until_ready(outs)

    add_r, sub_r, mul_r, div_r, gt_r, lt_r = outs

    # Reference check against plain jnp semantics (matches torch semantics).
    assert add_r.shape == x.shape and add_r.dtype == x.dtype
    assert jnp.allclose(add_r, x + 10)
    assert jnp.allclose(sub_r, x - 5)
    assert jnp.allclose(mul_r, x * 2)
    assert jnp.allclose(div_r, x / 2)
    assert bool(jnp.all(gt_r == (x > 5)))
    assert bool(jnp.all(lt_r == (x < 10)))
    assert gt_r.dtype == jnp.bool_ and lt_r.dtype == jnp.bool_

    print("KERNEL_OK")
</pallas_src>

<mosaic_0001>
module attributes {stable_mosaic.version = 11 : i64} {
  func.func @kernel(%arg0: i32, %arg1: memref<32x128xf32, #tpu.memory_space<vmem>>, %arg2: memref<32x128xf32, #tpu.memory_space<vmem>>, %arg3: memref<32x128xf32, #tpu.memory_space<vmem>>, %arg4: memref<32x128xf32, #tpu.memory_space<vmem>>, %arg5: memref<32x128xf32, #tpu.memory_space<vmem>>, %arg6: memref<32x128xi8, #tpu.memory_space<vmem>>, %arg7: memref<32x128xi8, #tpu.memory_space<vmem>>) attributes {dimension_semantics = [#tpu.dimension_semantics<parallel>], iteration_bounds = array<i64: 1>, scalar_prefetch = 0 : i64, scratch_operands = 0 : i64, tpu.core_type = #tpu.core_type<tc>, window_params = [{transform_indices = @transform_0, window_bounds = array<i64: 32, 128>}, {transform_indices = @transform_1, window_bounds = array<i64: 32, 128>}, {transform_indices = @transform_2, window_bounds = array<i64: 32, 128>}, {transform_indices = @transform_3, window_bounds = array<i64: 32, 128>}, {transform_indices = @transform_4, window_bounds = array<i64: 32, 128>}, {transform_indices = @transform_5, window_bounds = array<i64: 32, 128>}, {transform_indices = @transform_6, window_bounds = array<i64: 32, 128>}]} {
    %c0 = arith.constant 0 : index
    %c0_0 = arith.constant 0 : index
    %0 = vector.load %arg1[%c0, %c0_0] : memref<32x128xf32, #tpu.memory_space<vmem>>, vector<32x128xf32>
    %cst = arith.constant 1.000000e+01 : f32
    %1 = vector.broadcast %cst : f32 to vector<32x128xf32>
    %2 = arith.addf %0, %1 : vector<32x128xf32>
    %c0_1 = arith.constant 0 : index
    %c0_2 = arith.constant 0 : index
    %3 = vector.load %arg2[%c0_1, %c0_2] : memref<32x128xf32, #tpu.memory_space<vmem>>, vector<32x128xf32>
    tpu.vector_store %arg2[%c0_1, %c0_2], %2 {strides = array<i32>} : memref<32x128xf32, #tpu.memory_space<vmem>>, vector<32x128xf32>,
    %cst_3 = arith.constant 5.000000e+00 : f32
    %4 = vector.broadcast %cst_3 : f32 to vector<32x128xf32>
    %5 = arith.subf %0, %4 : vector<32x128xf32>
    %c0_4 = arith.constant 0 : index
    %c0_5 = arith.constant 0 : index
    %6 = vector.load %arg3[%c0_4, %c0_5] : memref<32x128xf32, #tpu.memory_space<vmem>>, vector<32x128xf32>
    tpu.vector_store %arg3[%c0_4, %c0_5], %5 {strides = array<i32>} : memref<32x128xf32, #tpu.memory_space<vmem>>, vector<32x128xf32>,
    %cst_6 = arith.constant 2.000000e+00 : f32
    %7 = vector.broadcast %cst_6 : f32 to vector<32x128xf32>
    %8 = arith.mulf %0, %7 : vector<32x128xf32>
    %c0_7 = arith.constant 0 : index
    %c0_8 = arith.constant 0 : index
    %9 = vector.load %arg4[%c0_7, %c0_8] : memref<32x128xf32, #tpu.memory_space<vmem>>, vector<32x128xf32>
    tpu.vector_store %arg4[%c0_7, %c0_8], %8 {strides = array<i32>} : memref<32x128xf32, #tpu.memory_space<vmem>>, vector<32x128xf32>,
    %cst_9 = arith.constant 5.000000e-01 : f32
    %10 = vector.broadcast %cst_9 : f32 to vector<32x128xf32>
    %11 = arith.mulf %0, %10 : vector<32x128xf32>
    %c0_10 = arith.constant 0 : index
    %c0_11 = arith.constant 0 : index
    %12 = vector.load %arg5[%c0_10, %c0_11] : memref<32x128xf32, #tpu.memory_space<vmem>>, vector<32x128xf32>
    tpu.vector_store %arg5[%c0_10, %c0_11], %11 {strides = array<i32>} : memref<32x128xf32, #tpu.memory_space<vmem>>, vector<32x128xf32>,
    %cst_12 = arith.constant 5.000000e+00 : f32
    %13 = vector.broadcast %cst_12 : f32 to vector<32x128xf32>
    %14 = arith.cmpf ogt, %0, %13 : vector<32x128xf32>
    %15 = arith.extui %14 : vector<32x128xi1> to vector<32x128xi8>
    %c0_13 = arith.constant 0 : index
    %c0_14 = arith.constant 0 : index
    %16 = vector.load %arg6[%c0_13, %c0_14] : memref<32x128xi8, #tpu.memory_space<vmem>>, vector<32x128xi8>
    tpu.vector_store %arg6[%c0_13, %c0_14], %15 {strides = array<i32>} : memref<32x128xi8, #tpu.memory_space<vmem>>, vector<32x128xi8>,
    %cst_15 = arith.constant 1.000000e+01 : f32
    %17 = vector.broadcast %cst_15 : f32 to vector<32x128xf32>
    %18 = arith.cmpf olt, %0, %17 : vector<32x128xf32>
    %19 = arith.extui %18 : vector<32x128xi1> to vector<32x128xi8>
    %c0_16 = arith.constant 0 : index
    %c0_17 = arith.constant 0 : index
    %20 = vector.load %arg7[%c0_16, %c0_17] : memref<32x128xi8, #tpu.memory_space<vmem>>, vector<32x128xi8>
    tpu.vector_store %arg7[%c0_16, %c0_17], %19 {strides = array<i32>} : memref<32x128xi8, #tpu.memory_space<vmem>>, vector<32x128xi8>,
    return
  }
  func.func @transform_0(%arg0: i32) -> (i32, i32) {
    %c0_i32 = arith.constant 0 : i32
    %c0_i32_0 = arith.constant 0 : i32
    return %arg0, %c0_i32 : i32, i32
  }
  func.func @transform_1(%arg0: i32) -> (i32, i32) {
    %c0_i32 = arith.constant 0 : i32
    %c0_i32_0 = arith.constant 0 : i32
    return %arg0, %c0_i32 : i32, i32
  }
  func.func @transform_2(%arg0: i32) -> (i32, i32) {
    %c0_i32 = arith.constant 0 : i32
    %c0_i32_0 = arith.constant 0 : i32
    return %arg0, %c0_i32 : i32, i32
  }
  func.func @transform_3(%arg0: i32) -> (i32, i32) {
    %c0_i32 = arith.constant 0 : i32
    %c0_i32_0 = arith.constant 0 : i32
    return %arg0, %c0_i32 : i32, i32
  }
  func.func @transform_4(%arg0: i32) -> (i32, i32) {
    %c0_i32 = arith.constant 0 : i32
    %c0_i32_0 = arith.constant 0 : i32
    return %arg0, %c0_i32 : i32, i32
  }
  func.func @transform_5(%arg0: i32) -> (i32, i32) {
    %c0_i32 = arith.constant 0 : i32
    %c0_i32_0 = arith.constant 0 : i32
    return %arg0, %c0_i32 : i32, i32
  }
  func.func @transform_6(%arg0: i32) -> (i32, i32) {
    %c0_i32 = arith.constant 0 : i32
    %c0_i32_0 = arith.constant 0 : i32
    return %arg0, %c0_i32 : i32, i32
  }
}

</mosaic_0001>

<bundles_post_ra>
// kernel: _forward_jit.1
= control target key start
LH: loop header
LB: loop body
LE: loop exit
PB: predicated region body
PF: predicated region fallthrough
CT: control target
= control target key end

     0   :  { %v129_v20 = vmov 0   ;;  %s249_s0 = inlined_call_operand.vmem [shape: f32[32,128], index: 0, kind: input, shape index: {}]   ;;  %s250_s1 = inlined_call_operand.vmem [shape: f32[32,128], index: 1, kind: output, shape index: {0}]   ;;  %s251_s2 = inlined_call_operand.vmem [shape: f32[32,128], index: 2, kind: output, shape index: {1}]   ;;  %s252_s3 = inlined_call_operand.vmem [shape: f32[32,128], index: 3, kind: output, shape index: {2}]   ;;  %s253_s4 = inlined_call_operand.vmem [shape: f32[32,128], index: 4, kind: output, shape index: {3}]   ;;  %s254_s5 = inlined_call_operand.vmem [shape: s8[32,128], index: 5, kind: output, shape index: {4}]   ;;  %s255_s6 = inlined_call_operand.vmem [shape: s8[32,128], index: 6, kind: output, shape index: {5}]  }
   0x1   :  { %v16_v0 = vld [vmem:[%s249_s0] sm:$0xff]  ;;  %v17_v1 = vld [vmem:[%s249_s0 + $0x8] sm:$0xff]  ;;  %v18_v2 = vld [vmem:[%s249_s0 + $0x10] sm:$0xff] }
   0x2   :  { %v20_v3 = vadd.f32 10.0, %v16_v0  ;;  %v21_v4 = vadd.f32 10.0, %v17_v1  ;;  %v22_v5 = vadd.f32 10.0, %v18_v2  ;;  %v19_v6 = vld [vmem:[%s249_s0 + $0x18] sm:$0xff]  ;;  %v124_v7 = vadd.f32 -5.0, %v16_v0 }
   0x3   :  { %v23_v8 = vadd.f32 10.0, %v19_v6  ;;  %v125_v9 = vadd.f32 -5.0, %v17_v1  ;;  %v126_v10 = vadd.f32 -5.0, %v18_v2  ;;  %v127_v11 = vadd.f32 -5.0, %v19_v6 }
   0x4   :  { %24 = vst [vmem:[%s250_s1] sm:$0xff] %v20_v3  ;;  %25 = vst [vmem:[%s250_s1 + $0x8] sm:$0xff] %v21_v4  ;;  %v36_v12 = vmul.f32 2.0, %v16_v0  ;;  %v37_v13 = vmul.f32 2.0, %v17_v1  ;;  %v38_v14 = vmul.f32 2.0, %v18_v2  ;;  %v39_v15 = vmul.f32 2.0, %v19_v6 }
   0x5   :  { %26 = vst [vmem:[%s250_s1 + $0x10] sm:$0xff] %v22_v5  ;;  %32 = vst [vmem:[%s251_s2] sm:$0xff] %v124_v7  ;;  %v44_v16 = vmul.f32 0.5, %v16_v0  ;;  %v45_v17 = vmul.f32 0.5, %v17_v1  ;;  %v46_v18 = vmul.f32 0.5, %v18_v2  ;;  %v47_v19 = vmul.f32 0.5, %v19_v6 }
   0x6   :  { %27 = vst [vmem:[%s250_s1 + $0x18] sm:$0xff] %v23_v8  ;;  %33 = vst [vmem:[%s251_s2 + $0x8] sm:$0xff] %v125_v9  ;;  %vm52_vm0 = vcmp.gt.f32.partialorder %v16_v0, 5.0  ;;  %vm53_vm1 = vcmp.gt.f32.partialorder %v17_v1, 5.0  ;;  %vm54_vm2 = vcmp.gt.f32.partialorder %v18_v2, 5.0  ;;  %vm55_vm3 = vcmp.gt.f32.partialorder %v19_v6, 5.0 }
   0x7   :  { %34 = vst [vmem:[%s251_s2 + $0x10] sm:$0xff] %v126_v10  ;;  %35 = vst [vmem:[%s251_s2 + $0x18] sm:$0xff] %v127_v11  ;;  %vm76_vm5 = vcmp.lt.f32.partialorder %v16_v0, 10.0  ;;  %vm77_vm6 = vcmp.lt.f32.partialorder %v17_v1, 10.0  ;;  %vm78_vm8 = vcmp.lt.f32.partialorder %v18_v2, 10.0  ;;  %vm79_vm9 = vcmp.lt.f32.partialorder %v19_v6, 10.0 }
   0x8   :  { %40 = vst [vmem:[%s252_s3] sm:$0xff] %v36_v12  ;;  %41 = vst [vmem:[%s252_s3 + $0x8] sm:$0xff] %v37_v13 }
   0x9   :  { %42 = vst [vmem:[%s252_s3 + $0x10] sm:$0xff] %v38_v14  ;;  %43 = vst [vmem:[%s252_s3 + $0x18] sm:$0xff] %v39_v15 }
   0xa   :  { %48 = vst [vmem:[%s253_s4] sm:$0xff] %v44_v16  ;;  %49 = vst [vmem:[%s253_s4 + $0x8] sm:$0xff] %v45_v17 }
   0xb   :  { %50 = vst [vmem:[%s253_s4 + $0x10] sm:$0xff] %v46_v18  ;;  %51 = vst [vmem:[%s253_s4 + $0x18] sm:$0xff] %v47_v19 }
   0xc   :  { %vm56_vm4 = vmpackc.low %vm53_vm1, %vm52_vm0 }
   0xd   :  { %vm57_vm7 = vmpackc.low %vm55_vm3, %vm54_vm2 }
   0xe   :  { %vm58_vm10 = vmpackc.even %vm57_vm7, %vm56_vm4 }
   0xf   :  { %v59_v21 = vsel %vm58_vm10, 16843009, %v129_v20  ;;  %vm80_vm11 = vmpackc.low %vm77_vm6, %vm76_vm5 }
  0x10   :  { %v60_v22 = vunpack.c.0.s8 %v59_v21  ;;  %v61_v23 = vunpack.c.1.s8 %v59_v21  ;;  %v62_v24 = vunpack.c.2.s8 %v59_v21  ;;  %v63_v25 = vunpack.c.3.s8 %v59_v21  ;;  %vm81_vm12 = vmpackc.low %vm79_vm9, %vm78_vm8 }
  0x11   :  { %vm82_vm13 = vmpackc.even %vm81_vm12, %vm80_vm11 }
  0x12   :  { %v64_v26 = vpack.c.b16 %v60_v22, %v60_v22  ;;  %v66_v27 = vpack.c.b16 %v61_v23, %v61_v23  ;;  %v68_v28 = vpack.c.b16 %v62_v24, %v62_v24  ;;  %v70_v29 = vpack.c.b16 %v63_v25, %v63_v25 }
  0x13   :  { %v83_v30 = vsel %vm82_vm13, 16843009, %v129_v20 }
  0x14   :  { %v65_v31 = vpack.c.b8 %v64_v26, %v64_v26  ;;  %v67_v32 = vpack.c.b8 %v66_v27, %v66_v27  ;;  %v69_v33 = vpack.c.b8 %v68_v28, %v68_v28  ;;  %v71_v34 = vpack.c.b8 %v70_v29, %v70_v29 }
  0x15   :  { %v84_v35 = vunpack.c.0.s8 %v83_v30  ;;  %v85_v36 = vunpack.c.1.s8 %v83_v30  ;;  %v86_v37 = vunpack.c.2.s8 %v83_v30  ;;  %v87_v38 = vunpack.c.3.s8 %v83_v30 }
  0x16   :  { %72 = vst [vmem:[%s254_s5] sm:$0x3] %v65_v31  ;;  %73 = vst [vmem:[%s254_s5 + $0x2] sm:$0x3] %v67_v32 }
  0x17   :  { %74 = vst [vmem:[%s254_s5 + $0x4] sm:$0x3] %v69_v33  ;;  %75 = vst [vmem:[%s254_s5 + $0x6] sm:$0x3] %v71_v34  ;;  %v88_v39 = vpack.c.b16 %v84_v35, %v84_v35  ;;  %v90_v40 = vpack.c.b16 %v85_v36, %v85_v36  ;;  %v92_v41 = vpack.c.b16 %v86_v37, %v86_v37 }
  0x18   :  { %v94_v42 = vpack.c.b16 %v87_v38, %v87_v38 }
  0x19   :  { %v89_v43 = vpack.c.b8 %v88_v39, %v88_v39  ;;  %v91_v44 = vpack.c.b8 %v90_v40, %v90_v40  ;;  %v93_v45 = vpack.c.b8 %v92_v41, %v92_v41 }
  0x1a   :  { %v95_v46 = vpack.c.b8 %v94_v42, %v94_v42 }
  0x1b   :  { %96 = vst [vmem:[%s255_s6] sm:$0x3] %v89_v43  ;;  %97 = vst [vmem:[%s255_s6 + $0x2] sm:$0x3] %v91_v44 }
  0x1c   :  { %98 = vst [vmem:[%s255_s6 + $0x4] sm:$0x3] %v93_v45  ;;  %99 = vst [vmem:[%s255_s6 + $0x6] sm:$0x3] %v95_v46 }

</bundles_post_ra>
